<compile_context>
chip_gen: v7x
topology: tpu7x:2x2x1
jax: 0.10.0
libtpu: 0.0.40
codegen_flags: <defaults>
</compile_context>

<pallas_src>
import functools

import jax
import jax.numpy as jnp
from jax import lax
from jax.experimental import pallas as pl
from jax.experimental.pallas import tpu as pltpu

LN_EPS = 1e-5  # torch.nn.LayerNorm default


def _round_up(x, m):
    return (x + m - 1) // m * m


def _ffn_kernel(x_ref, w1_ref, b1_ref, w2_ref, b2_ref, gamma_ref, beta_ref,
                o_ref, acc_ref, *, d_real):
    # x_ref: (TM, Dp)   w1_ref: (Dp, TH)   b1_ref: (1, TH)
    # w2_ref: (TH, Dp)  b2_ref/gamma/beta: (1, Dp)   acc_ref: (TM, Dp) f32
    k = pl.program_id(1)

    # linear1 + ReLU on this hidden slice (MXU matmul, f32 accumulation).
    h = jnp.dot(x_ref[...], w1_ref[...], preferred_element_type=jnp.float32)
    h = jnp.maximum(h + b1_ref[...], 0.0)

    # linear2 partial product for this hidden slice.
    partial = jnp.dot(h.astype(w2_ref.dtype), w2_ref[...],
                      preferred_element_type=jnp.float32)

    @pl.when(k == 0)
    def _():
        acc_ref[...] = partial

    @pl.when(k > 0)
    def _():
        acc_ref[...] += partial

    # Finalize: bias2 + ReLU + LayerNorm over the real d_real features.
    @pl.when(k == pl.num_programs(1) - 1)
    def _():
        y = jnp.maximum(acc_ref[...] + b2_ref[...], 0.0)  # pad cols stay exactly 0
        d_pad = y.shape[-1]
        inv_d = jnp.float32(1.0 / d_real)
        mean = jnp.sum(y, axis=-1, keepdims=True) * inv_d
        centered = y - mean
        if d_pad == d_real:
            masked = centered
        else:
            # Mask only the variance term; output pad lanes are zeroed by
            # gamma/beta padding and sliced off in the wrapper.
            lane = lax.broadcasted_iota(jnp.int32, y.shape, 1)
            masked = jnp.where(lane < d_real, centered, 0.0)
        var = jnp.sum(masked * masked, axis=-1, keepdims=True) * inv_d
        y_norm = centered * lax.rsqrt(var + LN_EPS)
        o_ref[...] = (y_norm * gamma_ref[...] + beta_ref[...]).astype(o_ref.dtype)


def prepare_ffn_params(w1, b1, w2, b2, gamma, beta, *, use_bf16=True):
    """Pad to lane-dense (multiple-of-128) shapes and cast once, outside the call.

    Linear weights are stored (in, out), i.e. transposed vs PyTorch's (out, in).
    Pad regions are exact zeros (the kernel relies on this for LayerNorm stats).
    """
    D, H = w1.shape
    D_pad = _round_up(D, 128)
    H_pad = _round_up(H, 128)
    w_dtype = jnp.bfloat16 if use_bf16 else jnp.float32
    return dict(
        d=D,
        w1=jnp.pad(w1.astype(w_dtype), ((0, D_pad - D), (0, H_pad - H))),
        b1=jnp.pad(b1.astype(jnp.float32), (0, H_pad - H)).reshape(1, H_pad),
        w2=jnp.pad(w2.astype(w_dtype), ((0, H_pad - H), (0, D_pad - D))),
        b2=jnp.pad(b2.astype(jnp.float32), (0, D_pad - D)).reshape(1, D_pad),
        gamma=jnp.pad(gamma.astype(jnp.float32), (0, D_pad - D)).reshape(1, D_pad),
        beta=jnp.pad(beta.astype(jnp.float32), (0, D_pad - D)).reshape(1, D_pad),
    )


def feed_forward_pallas(x, params, *, tile_m=256):
    """x: (B, S, D) float32.  params: output of prepare_ffn_params."""
    B, S, D = x.shape
    assert D == params["d"], "feature dim mismatch with prepared params"
    w1p, b1p, w2p = params["w1"], params["b1"], params["w2"]
    b2p, gp, bp = params["b2"], params["gamma"], params["beta"]
    D_pad, H_pad = w1p.shape
    M = B * S

    use_bf16 = w1p.dtype == jnp.bfloat16
    x_dtype = jnp.bfloat16 if use_bf16 else jnp.float32
    x_itemsize = jnp.dtype(x_dtype).itemsize
    w_itemsize = jnp.dtype(w1p.dtype).itemsize

    # Row tile: MXU-friendly default; shrink only when M itself is small.
    granule = 16 if use_bf16 else 8  # bf16 sublane packing
    tile_m = max(granule,
                 min(_round_up(tile_m, granule), _round_up(M, granule)))
    M_pad = _round_up(M, tile_m)
    n_m = M_pad // tile_m
    # TODO(synk): on v7x with small M, shard H (not M) across the 2 TensorCores
    # so each core only holds half of w1/w2.

    # VMEM budget from the actual chip, minus compiler-internal headroom.
    try:
        vmem_cap = pltpu.get_tpu_info().vmem_capacity_bytes
    except Exception:
        vmem_cap = 64 * 2**20
    vmem_usable = vmem_cap - max(16 * 2**20, vmem_cap // 6)

    def footprint(th, nh):
        wf = 1 if nh == 1 else 2  # stream (double-buffer) weights only if H is tiled
        return (2 * tile_m * D_pad * x_itemsize      # x tile (double-buffered)
                + 2 * tile_m * D_pad * 4             # out tile
                + tile_m * D_pad * 4                 # f32 accumulator scratch
                + wf * 2 * D_pad * th * w_itemsize   # w1 + w2 slices
                + wf * th * 4                        # b1 slice
                + 3 * D_pad * 4                      # b2, gamma, beta (single buffer)
                + tile_m * th * (4 + w_itemsize))    # h (f32) + bf16 copy

    # Largest hidden tile (multiple of 128 dividing H_pad) that fits the budget.
    n_units = H_pad // 128
    tile_h = 128
    for cand_n in range(1, n_units + 1):
        if n_units % cand_n:
            continue
        cand = H_pad // cand_n
        if footprint(cand, cand_n) <= 0.6 * vmem_usable:
            tile_h = cand
            break
    n_h = H_pad // tile_h

    vmem_limit = int(min(vmem_usable, max(2 * footprint(tile_h, n_h), 16 * 2**20)))

    # x slab: cast to bf16 *before* padding/DMA to halve x-side HBM traffic.
    x2d = jnp.pad(x.reshape(M, D).astype(x_dtype),
                  ((0, M_pad - M), (0, D_pad - D)))

    resident = pl.Buffered(1)                 # grid-invariant: no double-buffering
    w_mode = resident if n_h == 1 else None   # stream weights only when H is tiled

    def spec(shape, index_map, mode=None):
        if mode is None:
            return pl.BlockSpec(shape, index_map)
        return pl.BlockSpec(shape, index_map, pipeline_mode=mode)

    cost = pl.CostEstimate(
        flops=4 * M_pad * D_pad * H_pad,                 # two matmuls, 2 flops/MAC
        transcendentals=M_pad,                           # one rsqrt per row
        bytes_accessed=(M_pad * D_pad * x_itemsize       # x in
                        + n_m * 2 * D_pad * H_pad * w_itemsize   # weights per M-tile
                        + (H_pad + 3 * D_pad) * 4        # biases, gamma, beta
                        + M_pad * D_pad * 4),            # out
    )

    kernel = functools.partial(_ffn_kernel, d_real=D)

    out2d = pl.pallas_call(
        kernel,
        out_shape=jax.ShapeDtypeStruct((M_pad, D_pad), x.dtype),
        grid=(n_m, n_h),
        in_specs=[
            spec((tile_m, D_pad), lambda i, k: (i, 0)),            # x rows
            spec((D_pad, tile_h), lambda i, k: (0, k), w_mode),    # w1 slice
            spec((1, tile_h),     lambda i, k: (0, k), w_mode),    # b1 slice
            spec((tile_h, D_pad), lambda i, k: (k, 0), w_mode),    # w2 slice
            spec((1, D_pad),      lambda i, k: (0, 0), resident),  # b2
            spec((1, D_pad),      lambda i, k: (0, 0), resident),  # gamma
            spec((1, D_pad),      lambda i, k: (0, 0), resident),  # beta
        ],
        out_specs=pl.BlockSpec((tile_m, D_pad), lambda i, k: (i, 0)),
        scratch_shapes=[pltpu.VMEM((tile_m, D_pad), jnp.float32)],
        compiler_params=pltpu.CompilerParams(
            dimension_semantics=("parallel", "arbitrary"),
            vmem_limit_bytes=vmem_limit,
        ),
        cost_estimate=cost,
    )(x2d, w1p, b1p, w2p, b2p, gp, bp)

    return out2d[:M, :D].reshape(B, S, D)


def feed_forward_ref(x, w1, b1, w2, b2, gamma, beta):
    """Pure-JAX f32 reference mirroring the PyTorch module."""
    h = jnp.maximum(x @ w1 + b1, 0.0)
    y = jnp.maximum(h @ w2 + b2, 0.0)
    mean = jnp.mean(y, axis=-1, keepdims=True)
    var = jnp.mean((y - mean) ** 2, axis=-1, keepdims=True)
    return (y - mean) / jnp.sqrt(var + LN_EPS) * gamma + beta


if __name__ == "__main__":
    # Small shapes consistent with the module: (batch, seq, embedding_dim).
    B, S, D = 2, 8, 32
    scale = 4
    H = D * scale  # 128

    key = jax.random.PRNGKey(0)
    kx, kw1, kb1, kw2, kb2 = jax.random.split(key, 5)

    x = jax.random.normal(kx, (B, S, D), dtype=jnp.float32)

    # Linear weights stored as (in, out), i.e. transposed vs PyTorch's (out, in).
    bound1 = 1.0 / (D ** 0.5)
    w1 = jax.random.uniform(kw1, (D, H), jnp.float32, -bound1, bound1)
    b1 = jax.random.uniform(kb1, (H,), jnp.float32, -bound1, bound1)
    bound2 = 1.0 / (H ** 0.5)
    w2 = jax.random.uniform(kw2, (H, D), jnp.float32, -bound2, bound2)
    b2 = jax.random.uniform(kb2, (D,), jnp.float32, -bound2, bound2)
    gamma = jnp.ones((D,), jnp.float32)   # LayerNorm weight init
    beta = jnp.zeros((D,), jnp.float32)   # LayerNorm bias init

    # Parameter padding/casting hoisted out of the per-call path (done once).
    params = prepare_ffn_params(w1, b1, w2, b2, gamma, beta, use_bf16=True)

    out = feed_forward_pallas(x, params)
    out = jax.block_until_ready(out)

    ref = feed_forward_ref(x, w1, b1, w2, b2, gamma, beta)
    assert out.shape == (B, S, D)
    # bf16 matmuls with f32 accumulation: loosened tolerance vs the f32 reference.
    assert jnp.allclose(out, ref, atol=2e-2, rtol=2e-2), "mismatch vs reference"

    print("KERNEL_OK")
</pallas_src>

<mosaic_0001>
module attributes {stable_mosaic.version = 11 : i64} {
  func.func @_ffn_kernel(%arg0: i32, %arg1: i32, %arg2: memref<16x128xbf16, #tpu.memory_space<vmem>>, %arg3: memref<128x128xbf16, #tpu.memory_space<vmem>>, %arg4: memref<1x128xf32, #tpu.memory_space<vmem>>, %arg5: memref<128x128xbf16, #tpu.memory_space<vmem>>, %arg6: memref<1x128xf32, #tpu.memory_space<vmem>>, %arg7: memref<1x128xf32, #tpu.memory_space<vmem>>, %arg8: memref<1x128xf32, #tpu.memory_space<vmem>>, %arg9: memref<16x128xf32, #tpu.memory_space<vmem>>, %arg10: memref<16x128xf32, #tpu.memory_space<vmem>>) attributes {dimension_semantics = [#tpu.dimension_semantics<parallel>, #tpu.dimension_semantics<arbitrary>], iteration_bounds = array<i64: 1, 1>, scalar_prefetch = 0 : i64, scratch_operands = 1 : i64, tpu.core_type = #tpu.core_type<tc>, window_params = [{transform_indices = @transform_0, window_bounds = array<i64: 16, 128>}, {pipeline_mode = #tpu.pipeline_mode<synchronous>, transform_indices = @transform_1, window_bounds = array<i64: 128, 128>}, {pipeline_mode = #tpu.pipeline_mode<synchronous>, transform_indices = @transform_2, window_bounds = array<i64: 1, 128>}, {pipeline_mode = #tpu.pipeline_mode<synchronous>, transform_indices = @transform_3, window_bounds = array<i64: 128, 128>}, {pipeline_mode = #tpu.pipeline_mode<synchronous>, transform_indices = @transform_4, window_bounds = array<i64: 1, 128>}, {pipeline_mode = #tpu.pipeline_mode<synchronous>, transform_indices = @transform_5, window_bounds = array<i64: 1, 128>}, {pipeline_mode = #tpu.pipeline_mode<synchronous>, transform_indices = @transform_6, window_bounds = array<i64: 1, 128>}, {transform_indices = @transform_7, window_bounds = array<i64: 16, 128>}]} {
    %c0 = arith.constant 0 : index
    %c0_0 = arith.constant 0 : index
    %0 = vector.load %arg2[%c0, %c0_0] : memref<16x128xbf16, #tpu.memory_space<vmem>>, vector<16x128xbf16>
    %c0_1 = arith.constant 0 : index
    %c0_2 = arith.constant 0 : index
    %1 = vector.load %arg3[%c0_1, %c0_2] : memref<128x128xbf16, #tpu.memory_space<vmem>>, vector<128x128xbf16>
    %cst = arith.constant dense<0.000000e+00> : vector<16x128xf32>
    %2 = tpu.matmul %0, %1, %cst {dimension_numbers = #tpu.dot_dimension_numbers<[1], [0], [0], [1], [0, 0, 1, 1], [], []>} : vector<16x128xbf16>, vector<128x128xbf16>, vector<16x128xf32> -> vector<16x128xf32>
    %c0_3 = arith.constant 0 : index
    %c0_4 = arith.constant 0 : index
    %3 = vector.load %arg4[%c0_3, %c0_4] : memref<1x128xf32, #tpu.memory_space<vmem>>, vector<1x128xf32>
    %4 = vector.broadcast %3 : vector<1x128xf32> to vector<16x128xf32>
    %5 = arith.addf %2, %4 : vector<16x128xf32>
    %cst_5 = arith.constant 0.000000e+00 : f32
    %6 = vector.broadcast %cst_5 : f32 to vector<16x128xf32>
    %7 = arith.maximumf %5, %6 : vector<16x128xf32>
    %8 = arith.truncf %7 : vector<16x128xf32> to vector<16x128xbf16>
    %c0_6 = arith.constant 0 : index
    %c0_7 = arith.constant 0 : index
    %9 = vector.load %arg5[%c0_6, %c0_7] : memref<128x128xbf16, #tpu.memory_space<vmem>>, vector<128x128xbf16>
    %cst_8 = arith.constant dense<0.000000e+00> : vector<16x128xf32>
    %10 = tpu.matmul %8, %9, %cst_8 {dimension_numbers = #tpu.dot_dimension_numbers<[1], [0], [0], [1], [0, 0, 1, 1], [], []>} : vector<16x128xbf16>, vector<128x128xbf16>, vector<16x128xf32> -> vector<16x128xf32>
    %c0_i32 = arith.constant 0 : i32
    %11 = arith.cmpi eq, %arg1, %c0_i32 : i32
    %12 = arith.extui %11 : i1 to i32
    %c0_i32_9 = arith.constant 0 : i32
    %13 = arith.cmpi ne, %12, %c0_i32_9 : i32
    scf.if %13 {
      %c0_14 = arith.constant 0 : index
      %c0_15 = arith.constant 0 : index
      %20 = vector.load %arg10[%c0_14, %c0_15] : memref<16x128xf32, #tpu.memory_space<vmem>>, vector<16x128xf32>
      tpu.vector_store %arg10[%c0_14, %c0_15], %10 {strides = array<i32>} : memref<16x128xf32, #tpu.memory_space<vmem>>, vector<16x128xf32>,
    } else {
    }
    %c0_i32_10 = arith.constant 0 : i32
    %14 = arith.cmpi sgt, %arg1, %c0_i32_10 : i32
    %15 = arith.extui %14 : i1 to i32
    %c0_i32_11 = arith.constant 0 : i32
    %16 = arith.cmpi ne, %15, %c0_i32_11 : i32
    scf.if %16 {
      %c0_14 = arith.constant 0 : index
      %c0_15 = arith.constant 0 : index
      %20 = vector.load %arg10[%c0_14, %c0_15] : memref<16x128xf32, #tpu.memory_space<vmem>>, vector<16x128xf32>
      %21 = arith.addf %20, %10 : vector<16x128xf32>
      %c0_16 = arith.constant 0 : index
      %c0_17 = arith.constant 0 : index
      %22 = vector.load %arg10[%c0_16, %c0_17] : memref<16x128xf32, #tpu.memory_space<vmem>>, vector<16x128xf32>
      tpu.vector_store %arg10[%c0_16, %c0_17], %21 {strides = array<i32>} : memref<16x128xf32, #tpu.memory_space<vmem>>, vector<16x128xf32>,
    } else {
    }
    %c0_i32_12 = arith.constant 0 : i32
    %17 = arith.cmpi eq, %arg1, %c0_i32_12 : i32
    %18 = arith.extui %17 : i1 to i32
    %c0_i32_13 = arith.constant 0 : i32
    %19 = arith.cmpi ne, %18, %c0_i32_13 : i32
    scf.if %19 {
      %c0_14 = arith.constant 0 : index
      %c0_15 = arith.constant 0 : index
      %20 = vector.load %arg10[%c0_14, %c0_15] : memref<16x128xf32, #tpu.memory_space<vmem>>, vector<16x128xf32>
      %c0_16 = arith.constant 0 : index
      %c0_17 = arith.constant 0 : index
      %21 = vector.load %arg6[%c0_16, %c0_17] : memref<1x128xf32, #tpu.memory_space<vmem>>, vector<1x128xf32>
      %22 = vector.broadcast %21 : vector<1x128xf32> to vector<16x128xf32>
      %23 = arith.addf %20, %22 : vector<16x128xf32>
      %cst_18 = arith.constant 0.000000e+00 : f32
      %24 = vector.broadcast %cst_18 : f32 to vector<16x128xf32>
      %25 = arith.maximumf %23, %24 : vector<16x128xf32>
      %cst_19 = arith.constant dense<0.000000e+00> : vector<16xf32>
      %26 = vector.multi_reduction <add>, %25, %cst_19 [1] : vector<16x128xf32> to vector<16xf32>
      %27 = vector.shape_cast %26 : vector<16xf32> to vector<16x1xf32>
      %cst_20 = arith.constant 3.125000e-02 : f32
      %28 = vector.broadcast %cst_20 : f32 to vector<16x1xf32>
      %29 = arith.mulf %27, %28 : vector<16x1xf32>
      %30 = vector.broadcast %29 : vector<16x1xf32> to vector<16x128xf32>
      %31 = arith.subf %25, %30 : vector<16x128xf32>
      %32 = tpu.iota {dimensions = array<i32: 1>} : vector<16x128xi32>
      %c32_i32 = arith.constant 32 : i32
      %33 = vector.broadcast %c32_i32 : i32 to vector<16x128xi32>
      %34 = arith.cmpi slt, %32, %33 : vector<16x128xi32>
      %cst_21 = arith.constant 0.000000e+00 : f32
      %35 = vector.broadcast %cst_21 : f32 to vector<16x128xf32>
      %36 = arith.select %34, %31, %35 : vector<16x128xi1>, vector<16x128xf32>
      %37 = arith.mulf %36, %36 : vector<16x128xf32>
      %cst_22 = arith.constant dense<0.000000e+00> : vector<16xf32>
      %38 = vector.multi_reduction <add>, %37, %cst_22 [1] : vector<16x128xf32> to vector<16xf32>
      %39 = vector.shape_cast %38 : vector<16xf32> to vector<16x1xf32>
      %cst_23 = arith.constant 3.125000e-02 : f32
      %40 = vector.broadcast %cst_23 : f32 to vector<16x1xf32>
      %41 = arith.mulf %39, %40 : vector<16x1xf32>
      %cst_24 = arith.constant 9.99999974E-6 : f32
      %42 = vector.broadcast %cst_24 : f32 to vector<16x1xf32>
      %43 = arith.addf %41, %42 : vector<16x1xf32>
      %44 = math.rsqrt %43 : vector<16x1xf32>
      %45 = vector.broadcast %44 : vector<16x1xf32> to vector<16x128xf32>
      %46 = arith.mulf %31, %45 : vector<16x128xf32>
      %c0_25 = arith.constant 0 : index
      %c0_26 = arith.constant 0 : index
      %47 = vector.load %arg7[%c0_25, %c0_26] : memref<1x128xf32, #tpu.memory_space<vmem>>, vector<1x128xf32>
      %48 = vector.broadcast %47 : vector<1x128xf32> to vector<16x128xf32>
      %49 = arith.mulf %46, %48 : vector<16x128xf32>
      %c0_27 = arith.constant 0 : index
      %c0_28 = arith.constant 0 : index
      %50 = vector.load %arg8[%c0_27, %c0_28] : memref<1x128xf32, #tpu.memory_space<vmem>>, vector<1x128xf32>
      %51 = vector.broadcast %50 : vector<1x128xf32> to vector<16x128xf32>
      %52 = arith.addf %49, %51 : vector<16x128xf32>
      %c0_29 = arith.constant 0 : index
      %c0_30 = arith.constant 0 : index
      %53 = vector.load %arg9[%c0_29, %c0_30] : memref<16x128xf32, #tpu.memory_space<vmem>>, vector<16x128xf32>
      tpu.vector_store %arg9[%c0_29, %c0_30], %52 {strides = array<i32>} : memref<16x128xf32, #tpu.memory_space<vmem>>, vector<16x128xf32>,
    } else {
    }
    return
  }
  func.func @transform_0(%arg0: i32, %arg1: i32) -> (i32, i32) {
    %c0_i32 = arith.constant 0 : i32
    %c0_i32_0 = arith.constant 0 : i32
    return %arg0, %c0_i32 : i32, i32
  }
  func.func @transform_1(%arg0: i32, %arg1: i32) -> (i32, i32) {
    %c0_i32 = arith.constant 0 : i32
    %c0_i32_0 = arith.constant 0 : i32
    return %c0_i32, %arg1 : i32, i32
  }
  func.func @transform_2(%arg0: i32, %arg1: i32) -> (i32, i32) {
    %c0_i32 = arith.constant 0 : i32
    %c0_i32_0 = arith.constant 0 : i32
    return %c0_i32, %arg1 : i32, i32
  }
  func.func @transform_3(%arg0: i32, %arg1: i32) -> (i32, i32) {
    %c0_i32 = arith.constant 0 : i32
    %c0_i32_0 = arith.constant 0 : i32
    return %arg1, %c0_i32 : i32, i32
  }
  func.func @transform_4(%arg0: i32, %arg1: i32) -> (i32, i32) {
    %c0_i32 = arith.constant 0 : i32
    %c0_i32_0 = arith.constant 0 : i32
    %c0_i32_1 = arith.constant 0 : i32
    return %c0_i32, %c0_i32_0 : i32, i32
  }
  func.func @transform_5(%arg0: i32, %arg1: i32) -> (i32, i32) {
    %c0_i32 = arith.constant 0 : i32
    %c0_i32_0 = arith.constant 0 : i32
    %c0_i32_1 = arith.constant 0 : i32
    return %c0_i32, %c0_i32_0 : i32, i32
  }
  func.func @transform_6(%arg0: i32, %arg1: i32) -> (i32, i32) {
    %c0_i32 = arith.constant 0 : i32
    %c0_i32_0 = arith.constant 0 : i32
    %c0_i32_1 = arith.constant 0 : i32
    return %c0_i32, %c0_i32_0 : i32, i32
  }
  func.func @transform_7(%arg0: i32, %arg1: i32) -> (i32, i32) {
    %c0_i32 = arith.constant 0 : i32
    %c0_i32_0 = arith.constant 0 : i32
    return %arg0, %c0_i32 : i32, i32
  }
}

</mosaic_0001>

<bundles_post_ra>
// kernel: tpu_custom_call.1
= control target key start
LH: loop header
LB: loop body
LE: loop exit
PB: predicated region body
PF: predicated region fallthrough
CT: control target
= control target key end

     0   :  { %12 = vsyncpa [#allocation4], 0  ;;  %s724_s0 = inlined_call_operand.hbm [shape: bf16[16,128], index: 0, kind: input, shape index: {}]   ;;  %s725_s1 = inlined_call_operand.hbm [shape: bf16[128,128], index: 1, kind: input, shape index: {}]   ;;  %s726_s2 = inlined_call_operand.vmem [shape: f32[1,128], index: 2, kind: input, shape index: {}]   ;;  %s727_s3 = inlined_call_operand.hbm [shape: bf16[128,128], index: 3, kind: input, shape index: {}]   ;;  %s728_s4 = inlined_call_operand.vmem [shape: f32[1,128], index: 4, kind: input, shape index: {}]   ;;  %s729_s5 = inlined_call_operand.vmem [shape: f32[1,128], index: 5, kind: input, shape index: {}]   ;;  %s730_s6 = inlined_call_operand.vmem [shape: f32[1,128], index: 6, kind: input, shape index: {}]   ;;  %s731_s7 = inlined_call_operand.hbm [shape: f32[16,128], index: 7, kind: output, shape index: {}]  }
   0x1   :  { %13 = vsyncpa [#allocation7], 0 }
   0x2   :  { %14 = vsyncpa [#allocation5], 0  ;;  %s598_s24 = smov [#allocation6]   ;;  %s599_s26 = smov [#allocation3]  }
   0x3   :  { %s32_s25 = sshll.u32 %s598_s24, 4  ;;  %s20_s27 = sshll.u32 %s599_s26, 4  ;;  %s33_s25 = int_to_ptr.vmem [resolvable:$true] %s32_s25  ;;  %s648_s27 = int_to_ptr.vmem [resolvable:$true] %s20_s27 }
   0x4   :  { %s504_s30 = scalar_lea.hbm %s725_s1, 1024 }
   0x5   :  { %p505_p0 = scmp.ne.s32.totalorder %s725_s1, %s504_s30  ;;  %p508_p1 = scmp.lt.u32.totalorder %s504_s30, %s725_s1 }
   0x7   :  { %p510_p2 = pnand %p508_p1, %p505_p0 }
   0x9   :  { %513 = shalt.err (!%p510_p2)
}
   0xa   :  { %s514_s12 = scalar_lea.vmem %s33_s25, 1024  ;;  %p519_p4 = scmp.lt.s32.totalorder %s33_s25, %s33_s25 }
   0xb   :  { %p515_p3 = scmp.ne.s32.totalorder %s33_s25, %s514_s12  ;;  %p520_p5 = scmp.lt.s32.totalorder %s514_s12, %s514_s12 }
   0xd   :  { %p521_p6 = por %p520_p5, %p519_p4 }
   0xf   :  { %p522_p7 = pnand %p521_p6, %p515_p3 }
  0x11   :  { %525 = shalt.err (!%p522_p7)
}
  0x12   :  { %s600_s13 = smov 64   ;;  %s601_s14 = smov 4  }
  0x13   :  { %38 = dma.hbm_to_vmem [thread:$0]  %s725_s1, 1024, %s33_s25, [#allocation7], %s600_s13, %s600_s13, %s601_s14  }
  0x14   :  { %s526_s19 = scalar_lea.hbm %s724_s0, 128 }
  0x15   :  { %p527_p8 = scmp.ne.s32.totalorder %s724_s0, %s526_s19  ;;  %p530_p9 = scmp.lt.u32.totalorder %s526_s19, %s724_s0 }
  0x17   :  { %p532_p10 = pnand %p530_p9, %p527_p8 }
  0x19   :  { %535 = shalt.err (!%p532_p10)
}
  0x1a   :  { %s536_s24 = scalar_lea.vmem %s648_s27, 128  ;;  %p541_p12 = scmp.lt.s32.totalorder %s648_s27, %s648_s27 }
  0x1b   :  { %p537_p11 = scmp.ne.s32.totalorder %s648_s27, %s536_s24  ;;  %p542_p13 = scmp.lt.s32.totalorder %s536_s24, %s536_s24 }
  0x1d   :  { %p543_p0 = por %p542_p13, %p541_p12 }
  0x1f   :  { %p544_p1 = pnand %p543_p0, %p537_p11 }
  0x21   :  { %547 = shalt.err (!%p544_p1)
}
  0x22   :  { %26 = dma.hbm_to_vmem [thread:$0]  %s724_s0, 128, %s648_s27, [#allocation4], %s600_s13, %s600_s13, %s601_s14  }
  0x23   :  { %s602_s26 = smov [#allocation8]   ;;  %s548_s8 = scalar_lea.hbm %s727_s3, 1024 }
  0x24   :  { %s46_s28 = sshll.u32 %s602_s26, 4  ;;  %p549_p2 = scmp.ne.s32.totalorder %s727_s3, %s548_s8  ;;  %s47_s28 = int_to_ptr.vmem [resolvable:$true] %s46_s28 }
  0x25   :  { %p552_p3 = scmp.lt.u32.totalorder %s548_s8, %s727_s3 }
  0x27   :  { %p554_p4 = pnand %p552_p3, %p549_p2 }
  0x29   :  { %557 = shalt.err (!%p554_p4)
}
  0x2a   :  { %s558_s15 = scalar_lea.vmem %s47_s28, 1024  ;;  %p563_p6 = scmp.lt.s32.totalorder %s47_s28, %s47_s28 }
  0x2b   :  { %p559_p5 = scmp.ne.s32.totalorder %s47_s28, %s558_s15  ;;  %p564_p7 = scmp.lt.s32.totalorder %s558_s15, %s558_s15 }
  0x2d   :  { %p565_p8 = por %p564_p7, %p563_p6 }
  0x2f   :  { %p566_p9 = pnand %p565_p8, %p559_p5 }
  0x31   :  { %569 = shalt.err (!%p566_p9)
}
  0x32   :  { %52 = dma.hbm_to_vmem [thread:$0]  %s727_s3, 1024, %s47_s28, [#allocation7], %s600_s13, %s600_s13, %s601_s14  }
  0x33   :  { %592 = dma.done.wait [#allocation4], 128  }
  0x34   :  { %593 = vsyncadd [#allocation4], 4294967168 }
  0x35   :  { %594 = dma.done.wait [#allocation7], 2048  }
  0x36   :  { %595 = vsyncadd [#allocation7], 4294965248  ;;  %v603_v0 = vmov 0.0   ;;  %vm604_vm0 = vmmov 0   ;;  %v483_v1 = vld [vmem:[#allocation6] sm:$0xff]   ;;  %v484_v2 = vld [vmem:[#allocation6 + $0x8] sm:$0xff]   ;;  %v337_v37 = vlaneseq }
  0x37   :  { %433 = vmatprep.subr.bf16.mxu0 %v603_v0  ;;  %449 = vmatprep.mubr.msk.bf16.mxu0 %vm604_vm0, %v603_v0  ;;  %v485_v3 = vld [vmem:[#allocation6 + $0x10] sm:$0xff]   ;;  %v492_v4 = vld [vmem:[#allocation8] sm:$0xff]   ;;  %v486_v5 = vld [vmem:[#allocation6 + $0x18] sm:$0xff]   ;;  %s605_s19 = smov [#allocation9]  }
  0x38   :  { %453 = vmatprep.subr.bf16.mxu1 %v603_v0  ;;  %469 = vmatprep.mubr.msk.bf16.mxu1 %vm604_vm0, %v603_v0  ;;  %v493_v6 = vld [vmem:[#allocation8 + $0x8] sm:$0xff]   ;;  %v487_v7 = vld [vmem:[#allocation6 + $0x20] sm:$0xff]   ;;  %v494_v8 = vld [vmem:[#allocation8 + $0x10] sm:$0xff]   ;;  %v338_v38 = vand.u32 127, %v337_v37  ;;  %s381_s20 = sshll.u32 %s605_s19, 4  ;;  %s382_s20 = int_to_ptr.vmem [resolvable:$true] %s381_s20 }
  0x39   :  { %434 = vmatpush3.bf16.msra.mxu0 %v483_v1  ;;  %454 = vmatpush3.bf16.msra.mxu1 %v492_v4  ;;  %v488_v9 = vld [vmem:[#allocation6 + $0x28] sm:$0xff]   ;;  %v495_v10 = vld [vmem:[#allocation8 + $0x18] sm:$0xff]   ;;  %v489_v11 = vld [vmem:[#allocation6 + $0x30] sm:$0xff]   ;;  %s570_s21 = scalar_lea.vmem %s382_s20, 256  ;;  %p575_p11 = scmp.lt.s32.totalorder %s382_s20, %s382_s20 }
  0x3a   :  { %435 = vmatprep.subr.bf16.mxu0 %v603_v0  ;;  %455 = vmatprep.subr.bf16.mxu1 %v603_v0  ;;  %v496_v12 = vld [vmem:[#allocation8 + $0x20] sm:$0xff]   ;;  %v490_v13 = vld [vmem:[#allocation6 + $0x38] sm:$0xff]   ;;  %v497_v14 = vld [vmem:[#allocation8 + $0x28] sm:$0xff]   ;;  %vm339_vm1 = vcmp.lt.s32.totalorder %v338_v38, 32  ;;  %p571_p10 = scmp.ne.s32.totalorder %s382_s20, %s570_s21  ;;  %p576_p12 = scmp.lt.s32.totalorder %s570_s21, %s570_s21 }
  0x3b   :  { %v491_v15 = vld [vmem:[#allocation3] sm:$0xff]   ;;  %v498_v16 = vld [vmem:[#allocation8 + $0x30] sm:$0xff]  }
  0x3c   :  { %v499_v17 = vld [vmem:[#allocation8 + $0x38] sm:$0xff]   ;;  %p577_p13 = por %p576_p12, %p575_p11 }
  0x3d   :  { %436 = vmatpush3.bf16.msra.mxu0 %v484_v2  ;;  %456 = vmatpush3.bf16.msra.mxu1 %v493_v6  ;;  %v394_v18 = vld [vmem:[%s726_s2] ss:$0 sm:$0xff] }
  0x3e   :  { %437 = vmatprep.subr.bf16.mxu0 %v603_v0  ;;  %457 = vmatprep.subr.bf16.mxu1 %v603_v0  ;;  %v412_v28 = vld [vmem:[%s728_s4] ss:$0 sm:$0xff]  ;;  %p578_p0 = pnand %p577_p13, %p571_p10 }
  0x3f   :  { %v413_v56 = vld [vmem:[%s729_s5] ss:$0 sm:$0xff] }
  0x40   :  { %v414_v58 = vld [vmem:[%s730_s6] ss:$0 sm:$0xff] }
  0x41   :  { %438 = vmatpush3.bf16.msra.mxu0 %v485_v3  ;;  %458 = vmatpush3.bf16.msra.mxu1 %v494_v8 }
  0x42   :  { %439 = vmatprep.subr.bf16.mxu0 %v603_v0  ;;  %459 = vmatprep.subr.bf16.mxu1 %v603_v0 }
  0x45   :  { %440 = vmatpush3.bf16.msra.mxu0 %v486_v5  ;;  %460 = vmatpush3.bf16.msra.mxu1 %v495_v10 }
  0x46   :  { %441 = vmatprep.subr.bf16.mxu0 %v603_v0  ;;  %461 = vmatprep.subr.bf16.mxu1 %v603_v0 }
  0x49   :  { %442 = vmatpush3.bf16.msra.mxu0 %v487_v7  ;;  %462 = vmatpush3.bf16.msra.mxu1 %v496_v12 }
  0x4a   :  { %443 = vmatprep.subr.bf16.mxu0 %v603_v0  ;;  %463 = vmatprep.subr.bf16.mxu1 %v603_v0 }
  0x4d   :  { %444 = vmatpush3.bf16.msra.mxu0 %v488_v9  ;;  %464 = vmatpush3.bf16.msra.mxu1 %v497_v14 }
  0x4e   :  { %445 = vmatprep.subr.bf16.mxu0 %v603_v0  ;;  %465 = vmatprep.subr.bf16.mxu1 %v603_v0 }
  0x51   :  { %446 = vmatpush3.bf16.msra.mxu0 %v489_v11  ;;  %466 = vmatpush3.bf16.msra.mxu1 %v498_v16 }
  0x52   :  { %447 = vmatprep.subr.bf16.mxu0 %v603_v0  ;;  %467 = vmatprep.subr.bf16.mxu1 %v603_v0 }
  0x55   :  { %448 = vmatpush3.bf16.msra.mxu0 %v490_v13  ;;  %468 = vmatpush3.bf16.msra.mxu1 %v499_v17 }
  0x58   :  { %450 = vmatmul.mubr.bf16.vlgmr.msra.gmra.mrb[0].mxu0 %v491_v15 }
 0x12b   :  { %v182_v19 = vpop.f32.mrb[0].mxu0 }
 0x12c   :  { %v183_v20 = vadd.f32 %v394_v18, %v182_v19  ;;  %v451_v21 = vpop.f32.mrb[1].mxu0 }
 0x12d   :  { %v185_v22 = vpop.f32.mrb[2].mxu0 }
 0x12e   :  { %v186_v23 = vadd.f32 %v394_v18, %v185_v22  ;;  %v452_v24 = vpop.f32.mrb[3].mxu0  ;;  %v189_v25 = vmax.f32 %v183_v20, 0.0 }
 0x130   :  { %v190_v26 = vmax.f32 %v186_v23, 0.0 }
 0x132   :  { %v191_v27 = vpack.c.bf16 %v190_v26, %v189_v25 }
 0x134   :  { %470 = vmatmul.mubr.bf16.vlgmr.msra.gmra.mrb[0].mxu1 %v191_v27 }
 0x207   :  { %v290_v29 = vpop.f32.mrb[0].mxu1 }
 0x208   :  { %v325_v30 = vadd.f32 %v412_v28, %v290_v29  ;;  %v471_v31 = vpop.f32.mrb[1].mxu1 }
 0x209   :  { %v293_v32 = vpop.f32.mrb[2].mxu1 }
 0x20a   :  { %v327_v33 = vmax.f32 %v325_v30, 0.0  ;;  %v326_v34 = vadd.f32 %v412_v28, %v293_v32  ;;  %v472_v35 = vpop.f32.mrb[3].mxu1 }
 0x20c   :  { %329 = vadd.xlane.f32.xlu0 %v327_v33  ;;  %v328_v36 = vmax.f32 %v326_v34, 0.0 }
 0x210   :  { %331 = vadd.xlane.f32.xlu0 %v328_v36 }
 0x299   :  { %v330_v39 = vpop.xlane.xlu0 %329 }
 0x29a   :  { %v333_v40 = vmul.f32 0.03125, %v330_v39 }
 0x29c   :  { %v335_v41 = vsub.f32 %v327_v33, %v333_v40 }
 0x29d   :  { %v332_v42 = vpop.xlane.xlu0 %331 }
 0x29e   :  { %v334_v43 = vmul.f32 0.03125, %v332_v42  ;;  %v340_v44 = vsel %vm339_vm1, %v335_v41, 0.0 }
 0x29f   :  { %v342_v45 = vmul.f32 %v340_v44, %v340_v44 }
 0x2a0   :  { %v336_v46 = vsub.f32 %v328_v36, %v334_v43 }
 0x2a1   :  { %344 = vadd.xlane.f32.xlu1 %v342_v45 }
 0x2a2   :  { %v341_v47 = vsel %vm339_vm1, %v336_v46, 0.0 }
 0x2a3   :  { %v343_v48 = vmul.f32 %v341_v47, %v341_v47 }
 0x2a5   :  { %346 = vadd.xlane.f32.xlu1 %v343_v48 }
 0x32e   :  { %v345_v49 = vpop.xlane.xlu1 %344 }
 0x32f   :  { %v348_v50 = vmul.f32 0.03125, %v345_v49 }
 0x331   :  { %v350_v51 = vadd.f32 1e-05, %v348_v50 }
 0x332   :  { %v347_v52 = vpop.xlane.xlu1 %346 }
 0x333   :  { %500 = vrsqrt.f32 %v350_v51  ;;  %v349_v53 = vmul.f32 0.03125, %v347_v52 }
 0x335   :  { %v351_v54 = vadd.f32 1e-05, %v349_v53 }
 0x337   :  { %502 = vrsqrt.f32 %v351_v54 }
 0x33d   :  { %v501_v55 = vpop.eup %500 }
 0x33e   :  { %v354_v57 = vmul.f32 %v501_v55, %v335_v41 }
 0x340   :  { %v363_v59 = vmul.f32 %v413_v56, %v354_v57 }
 0x341   :  { %v503_v60 = vpop.eup %502 }
 0x342   :  { %v355_v61 = vmul.f32 %v503_v60, %v336_v46  ;;  %v372_v62 = vadd.f32 %v414_v58, %v363_v59 }
 0x344   :  { %v364_v63 = vmul.f32 %v413_v56, %v355_v61  ;;  %374 = vst [vmem:[#allocation9] sm:$0xff] %v372_v62 }
 0x346   :  { %v373_v0 = vadd.f32 %v414_v58, %v364_v63 }
 0x348   :  { %375 = vst [vmem:[#allocation9 + $0x8] sm:$0xff] %v373_v0 }
 0x349   :  { %581 = shalt.err (!%p578_p0)
}
 0x34a   :  { %s582_s22 = scalar_lea.hbm %s731_s7, 256 }
 0x34b   :  { %p583_p1 = scmp.ne.s32.totalorder %s731_s7, %s582_s22  ;;  %p586_p2 = scmp.lt.u32.totalorder %s582_s22, %s731_s7 }
 0x34d   :  { %p588_p3 = pnand %p586_p2, %p583_p1 }
 0x34f   :  { %591 = shalt.err (!%p588_p3)
}
 0x350   :  { %s606_s26 = smov 128   ;;  %s607_s28 = smov 8  }
 0x351   :  { %387 = dma.vmem_to_hbm [thread:$0]  %s382_s20, 256, %s731_s7, [#allocation5], %s606_s26, %s606_s26, %s607_s28  }
 0x352   :  { %596 = dma.done.wait [#allocation5], 256  }
 0x353   :  { %597 = vsyncadd [#allocation5], 4294967040 }
 0x354   :  { %391 = vsyncpa [#allocation4], 1 }
 0x355   :  { %392 = vsyncpa [#allocation7], 1 }
 0x356   :  { %393 = vsyncpa [#allocation5], 1 }

</bundles_post_ra>
